<compile_context>
chip_gen: v5e
topology: v5e:2x2
jax: 0.10.0
libtpu: 0.0.40
codegen_flags: <defaults>
</compile_context>

<pallas_src>
import jax
import jax.numpy as jnp
from jax.experimental import pallas as pl
from jax.experimental.pallas import tpu as pltpu

# --- module constants (from the PyTorch source) ---
RAISE_AMOUNTS = [10, 25, 50, 100, 150, 200, 250, 300, 400, 500]
RAISE_IDX = 3


def n_actions() -> int:
    return RAISE_IDX + len(RAISE_AMOUNTS)          # = 13


def n_observations() -> int:
    return 67


HIDDEN = 128
N_OUT_PAD = 128            # lane-dense padded output width (>= n_actions())
DEFAULT_TILE_BATCH = 2048  # sweep point from {1024, 2048, 4096}; amortizes step overhead


def dqn_kernel(x_ref, w1_ref, b1_ref, w2_ref, b2_ref, w3_ref, b3_ref, o_ref):
    """relu(x W1 + b1) -> relu(. W2 + b2) -> . W3 + b3 on one batch tile.

    x arrives f32 and is cast to bf16 in-kernel; matmuls are bf16 MXU ops with
    f32 accumulation; bias-add / ReLU epilogue stays f32 (no bf16 VPU on v5e).
    The last matmul / store are a full 128 lanes wide (zero-padded W3/b3).
    """
    x = x_ref[...].astype(jnp.bfloat16)                                   # [TB, F]
    h1 = jnp.dot(x, w1_ref[...], preferred_element_type=jnp.float32)     # [TB, 128]
    h1 = jnp.maximum(h1 + b1_ref[...], 0.0)
    h2 = jnp.dot(h1.astype(jnp.bfloat16), w2_ref[...],
                 preferred_element_type=jnp.float32)                     # [TB, 128]
    h2 = jnp.maximum(h2 + b2_ref[...], 0.0)
    o = jnp.dot(h2.astype(jnp.bfloat16), w3_ref[...],
                preferred_element_type=jnp.float32)                      # [TB, 128]
    o_ref[...] = o + b3_ref[...]


def _prepare_weights(params, feat):
    """Param prep (tiny; cache/jit it for repeated calls):

    * W1 rows are zero-padded from n_observations() up to `feat` so the kernel
      consumes full input rows (equivalent to x[..., :n_state] @ W1, since the
      extra features multiply exact zeros).
    * W3 / b3 columns are zero-padded to N_OUT_PAD for lane-dense stores.
    * Matmul operands are bf16 (MXU-native); biases stay f32 for the epilogue.
    """
    n_state = n_observations()
    n_act = n_actions()
    w1, b1, w2, b2, w3, b3 = params
    w1b = w1.astype(jnp.bfloat16)
    if feat > n_state:
        w1b = jnp.pad(w1b, ((0, feat - n_state), (0, 0)))
    w2b = w2.astype(jnp.bfloat16)
    w3b = jnp.pad(w3.astype(jnp.bfloat16), ((0, 0), (0, N_OUT_PAD - n_act)))
    b1f = b1.astype(jnp.float32)
    b2f = b2.astype(jnp.float32)
    b3f = jnp.pad(b3.astype(jnp.float32), ((0, 0), (0, N_OUT_PAD - n_act)))
    return w1b, b1f, w2b, b2f, w3b, b3f


def _batch_dim_semantics():
    """CORE_PARALLEL actually splits the batch grid across v7x's two
    TensorCores; plain "parallel" elsewhere (single-TC v5e/v6e)."""
    try:
        kind = jax.devices()[0].device_kind.lower()
    except Exception:
        kind = ""
    return (pltpu.CORE_PARALLEL,) if "v7" in kind else ("parallel",)


def dqn_forward(x, params, *, tile_batch=DEFAULT_TILE_BATCH):
    """x: [..., F] with F >= n_observations(). Returns [..., n_actions()] (f32)."""
    n_state = n_observations()
    n_act = n_actions()
    feat = x.shape[-1]
    assert feat >= n_state, f"need at least {n_state} features, got {feat}"
    lead_shape = x.shape[:-1]
    x2d = x.reshape((-1, feat))     # no slice / no cast: x is read exactly once, in-kernel
    batch = x2d.shape[0]

    # Batch tile: multiple of 16 (bf16 sublane packing of the in-kernel cast);
    # if the whole batch fits in one block, use it exactly (block == full dim
    # is always legal, no ragged handling needed).
    tb = max(16, (int(tile_batch) // 16) * 16)
    if batch <= tb:
        tb = batch
    grid = (pl.cdiv(batch, tb),)

    w1b, b1f, w2b, b2f, w3b, b3f = _prepare_weights(params, feat)

    resident = lambda i: (0, 0)     # weights/biases: same block every grid step (VMEM-resident)

    out = pl.pallas_call(
        dqn_kernel,
        out_shape=jax.ShapeDtypeStruct((batch, N_OUT_PAD), jnp.float32),
        grid=grid,
        in_specs=[
            pl.BlockSpec((tb, feat), lambda i: (i, 0)),   # x: tiled over batch
            pl.BlockSpec(w1b.shape, resident),
            pl.BlockSpec(b1f.shape, resident),
            pl.BlockSpec(w2b.shape, resident),
            pl.BlockSpec(b2f.shape, resident),
            pl.BlockSpec(w3b.shape, resident),
            pl.BlockSpec(b3f.shape, resident),
        ],
        out_specs=pl.BlockSpec((tb, N_OUT_PAD), lambda i: (i, 0)),
        compiler_params=pltpu.CompilerParams(
            dimension_semantics=_batch_dim_semantics()),
    )(x2d, w1b, b1f, w2b, b2f, w3b, b3f)
    # Lane-dense kernel output; slice the 13 real action columns afterwards.
    return out[:, :n_act].reshape(lead_shape + (n_act,))


def init_params(key):
    """Deterministic init mimicking nn.Linear default (uniform +/- 1/sqrt(fan_in)).

    Weights are stored as [in, out]; biases as [1, out] for TPU 2-D layout.
    """
    dims = [(n_observations(), HIDDEN), (HIDDEN, HIDDEN), (HIDDEN, n_actions())]
    params = []
    for fan_in, fan_out in dims:
        key, kw, kb = jax.random.split(key, 3)
        bound = 1.0 / jnp.sqrt(float(fan_in))
        w = jax.random.uniform(kw, (fan_in, fan_out), jnp.float32, -bound, bound)
        b = jax.random.uniform(kb, (1, fan_out), jnp.float32, -bound, bound)
        params.extend([w, b])
    return tuple(params)


def reference_forward(x, params):
    """Pure-JAX reference with the same bf16-matmul / f32-accumulate casting."""
    w1, b1, w2, b2, w3, b3 = params
    xs = x[..., :n_observations()].astype(jnp.bfloat16)
    h1 = jnp.maximum(jnp.dot(xs, w1.astype(jnp.bfloat16),
                             preferred_element_type=jnp.float32) + b1[0], 0.0)
    h2 = jnp.maximum(jnp.dot(h1.astype(jnp.bfloat16), w2.astype(jnp.bfloat16),
                             preferred_element_type=jnp.float32) + b2[0], 0.0)
    return jnp.dot(h2.astype(jnp.bfloat16), w3.astype(jnp.bfloat16),
                   preferred_element_type=jnp.float32) + b3[0]


if __name__ == "__main__":
    key = jax.random.PRNGKey(0)
    key, kp, kx1, kx2 = jax.random.split(key, 4)
    params = init_params(kp)

    # 1) Small demo batch, feature dim == 67 (single exact block, grid=(1,)).
    batch = 16
    x = jax.random.normal(kx1, (batch, n_observations()), jnp.float32)
    out = jax.block_until_ready(dqn_forward(x, params))
    ref = reference_forward(x, params)
    assert out.shape == (batch, n_actions())
    assert jnp.allclose(out, ref, atol=1e-2, rtol=1e-2)

    # 2) Multi-tile batch with a ragged last tile AND a wider feature dim
    #    (exercises the zero-padded-W1 feature handling and the ragged final
    #    writeback), using a reduced tile size to force several grid steps.
    batch2, feat2 = 300, 80
    x2 = jax.random.normal(kx2, (batch2, feat2), jnp.float32)
    out2 = jax.block_until_ready(dqn_forward(x2, params, tile_batch=128))
    ref2 = reference_forward(x2, params)
    assert out2.shape == (batch2, n_actions())
    assert jnp.allclose(out2, ref2, atol=1e-2, rtol=1e-2)

    print("KERNEL_OK")
</pallas_src>

<mosaic_0001>
module attributes {stable_mosaic.version = 11 : i64} {
  func.func @dqn_kernel(%arg0: i32, %arg1: memref<16x67xf32, #tpu.memory_space<vmem>>, %arg2: memref<67x128xbf16, #tpu.memory_space<vmem>>, %arg3: memref<1x128xf32, #tpu.memory_space<vmem>>, %arg4: memref<128x128xbf16, #tpu.memory_space<vmem>>, %arg5: memref<1x128xf32, #tpu.memory_space<vmem>>, %arg6: memref<128x128xbf16, #tpu.memory_space<vmem>>, %arg7: memref<1x128xf32, #tpu.memory_space<vmem>>, %arg8: memref<16x128xf32, #tpu.memory_space<vmem>>) attributes {dimension_semantics = [#tpu.dimension_semantics<parallel>], iteration_bounds = array<i64: 1>, scalar_prefetch = 0 : i64, scratch_operands = 0 : i64, tpu.core_type = #tpu.core_type<tc>, window_params = [{transform_indices = @transform_0, window_bounds = array<i64: 16, 67>}, {pipeline_mode = #tpu.pipeline_mode<synchronous>, transform_indices = @transform_1, window_bounds = array<i64: 67, 128>}, {pipeline_mode = #tpu.pipeline_mode<synchronous>, transform_indices = @transform_2, window_bounds = array<i64: 1, 128>}, {pipeline_mode = #tpu.pipeline_mode<synchronous>, transform_indices = @transform_3, window_bounds = array<i64: 128, 128>}, {pipeline_mode = #tpu.pipeline_mode<synchronous>, transform_indices = @transform_4, window_bounds = array<i64: 1, 128>}, {pipeline_mode = #tpu.pipeline_mode<synchronous>, transform_indices = @transform_5, window_bounds = array<i64: 128, 128>}, {pipeline_mode = #tpu.pipeline_mode<synchronous>, transform_indices = @transform_6, window_bounds = array<i64: 1, 128>}, {transform_indices = @transform_7, window_bounds = array<i64: 16, 128>}]} {
    %c0 = arith.constant 0 : index
    %c0_0 = arith.constant 0 : index
    %0 = vector.load %arg1[%c0, %c0_0] : memref<16x67xf32, #tpu.memory_space<vmem>>, vector<16x67xf32>
    %1 = arith.truncf %0 : vector<16x67xf32> to vector<16x67xbf16>
    %c0_1 = arith.constant 0 : index
    %c0_2 = arith.constant 0 : index
    %2 = vector.load %arg2[%c0_1, %c0_2] : memref<67x128xbf16, #tpu.memory_space<vmem>>, vector<67x128xbf16>
    %cst = arith.constant dense<0.000000e+00> : vector<16x128xf32>
    %3 = tpu.matmul %1, %2, %cst {dimension_numbers = #tpu.dot_dimension_numbers<[1], [0], [0], [1], [0, 0, 1, 1], [], []>} : vector<16x67xbf16>, vector<67x128xbf16>, vector<16x128xf32> -> vector<16x128xf32>
    %c0_3 = arith.constant 0 : index
    %c0_4 = arith.constant 0 : index
    %4 = vector.load %arg3[%c0_3, %c0_4] : memref<1x128xf32, #tpu.memory_space<vmem>>, vector<1x128xf32>
    %5 = vector.broadcast %4 : vector<1x128xf32> to vector<16x128xf32>
    %6 = arith.addf %3, %5 : vector<16x128xf32>
    %cst_5 = arith.constant 0.000000e+00 : f32
    %7 = vector.broadcast %cst_5 : f32 to vector<16x128xf32>
    %8 = arith.maximumf %6, %7 : vector<16x128xf32>
    %9 = arith.truncf %8 : vector<16x128xf32> to vector<16x128xbf16>
    %c0_6 = arith.constant 0 : index
    %c0_7 = arith.constant 0 : index
    %10 = vector.load %arg4[%c0_6, %c0_7] : memref<128x128xbf16, #tpu.memory_space<vmem>>, vector<128x128xbf16>
    %cst_8 = arith.constant dense<0.000000e+00> : vector<16x128xf32>
    %11 = tpu.matmul %9, %10, %cst_8 {dimension_numbers = #tpu.dot_dimension_numbers<[1], [0], [0], [1], [0, 0, 1, 1], [], []>} : vector<16x128xbf16>, vector<128x128xbf16>, vector<16x128xf32> -> vector<16x128xf32>
    %c0_9 = arith.constant 0 : index
    %c0_10 = arith.constant 0 : index
    %12 = vector.load %arg5[%c0_9, %c0_10] : memref<1x128xf32, #tpu.memory_space<vmem>>, vector<1x128xf32>
    %13 = vector.broadcast %12 : vector<1x128xf32> to vector<16x128xf32>
    %14 = arith.addf %11, %13 : vector<16x128xf32>
    %cst_11 = arith.constant 0.000000e+00 : f32
    %15 = vector.broadcast %cst_11 : f32 to vector<16x128xf32>
    %16 = arith.maximumf %14, %15 : vector<16x128xf32>
    %17 = arith.truncf %16 : vector<16x128xf32> to vector<16x128xbf16>
    %c0_12 = arith.constant 0 : index
    %c0_13 = arith.constant 0 : index
    %18 = vector.load %arg6[%c0_12, %c0_13] : memref<128x128xbf16, #tpu.memory_space<vmem>>, vector<128x128xbf16>
    %cst_14 = arith.constant dense<0.000000e+00> : vector<16x128xf32>
    %19 = tpu.matmul %17, %18, %cst_14 {dimension_numbers = #tpu.dot_dimension_numbers<[1], [0], [0], [1], [0, 0, 1, 1], [], []>} : vector<16x128xbf16>, vector<128x128xbf16>, vector<16x128xf32> -> vector<16x128xf32>
    %c0_15 = arith.constant 0 : index
    %c0_16 = arith.constant 0 : index
    %20 = vector.load %arg7[%c0_15, %c0_16] : memref<1x128xf32, #tpu.memory_space<vmem>>, vector<1x128xf32>
    %21 = vector.broadcast %20 : vector<1x128xf32> to vector<16x128xf32>
    %22 = arith.addf %19, %21 : vector<16x128xf32>
    %c0_17 = arith.constant 0 : index
    %c0_18 = arith.constant 0 : index
    %23 = vector.load %arg8[%c0_17, %c0_18] : memref<16x128xf32, #tpu.memory_space<vmem>>, vector<16x128xf32>
    tpu.vector_store %arg8[%c0_17, %c0_18], %22 {strides = array<i32>} : memref<16x128xf32, #tpu.memory_space<vmem>>, vector<16x128xf32>,
    return
  }
  func.func @transform_0(%arg0: i32) -> (i32, i32) {
    %c0_i32 = arith.constant 0 : i32
    %c0_i32_0 = arith.constant 0 : i32
    return %arg0, %c0_i32 : i32, i32
  }
  func.func @transform_1(%arg0: i32) -> (i32, i32) {
    %c0_i32 = arith.constant 0 : i32
    %c0_i32_0 = arith.constant 0 : i32
    %c0_i32_1 = arith.constant 0 : i32
    return %c0_i32, %c0_i32_0 : i32, i32
  }
  func.func @transform_2(%arg0: i32) -> (i32, i32) {
    %c0_i32 = arith.constant 0 : i32
    %c0_i32_0 = arith.constant 0 : i32
    %c0_i32_1 = arith.constant 0 : i32
    return %c0_i32, %c0_i32_0 : i32, i32
  }
  func.func @transform_3(%arg0: i32) -> (i32, i32) {
    %c0_i32 = arith.constant 0 : i32
    %c0_i32_0 = arith.constant 0 : i32
    %c0_i32_1 = arith.constant 0 : i32
    return %c0_i32, %c0_i32_0 : i32, i32
  }
  func.func @transform_4(%arg0: i32) -> (i32, i32) {
    %c0_i32 = arith.constant 0 : i32
    %c0_i32_0 = arith.constant 0 : i32
    %c0_i32_1 = arith.constant 0 : i32
    return %c0_i32, %c0_i32_0 : i32, i32
  }
  func.func @transform_5(%arg0: i32) -> (i32, i32) {
    %c0_i32 = arith.constant 0 : i32
    %c0_i32_0 = arith.constant 0 : i32
    %c0_i32_1 = arith.constant 0 : i32
    return %c0_i32, %c0_i32_0 : i32, i32
  }
  func.func @transform_6(%arg0: i32) -> (i32, i32) {
    %c0_i32 = arith.constant 0 : i32
    %c0_i32_0 = arith.constant 0 : i32
    %c0_i32_1 = arith.constant 0 : i32
    return %c0_i32, %c0_i32_0 : i32, i32
  }
  func.func @transform_7(%arg0: i32) -> (i32, i32) {
    %c0_i32 = arith.constant 0 : i32
    %c0_i32_0 = arith.constant 0 : i32
    return %arg0, %c0_i32 : i32, i32
  }
}

</mosaic_0001>

<bundles_post_ra>
// kernel: tpu_custom_call.1
= control target key start
LH: loop header
LB: loop body
LE: loop exit
PB: predicated region body
PF: predicated region fallthrough
CT: control target
= control target key end

     0   :  { %12 = vsyncpa [#allocation3], 0  ;;  %s674_s0 = inlined_call_operand.hbm [shape: f32[16,67], index: 0, kind: input, shape index: {}]   ;;  %s675_s1 = inlined_call_operand.hbm [shape: bf16[67,128], index: 1, kind: input, shape index: {}]   ;;  %s676_s2 = inlined_call_operand.vmem [shape: f32[1,128], index: 2, kind: input, shape index: {}]   ;;  %s677_s3 = inlined_call_operand.hbm [shape: bf16[128,128], index: 3, kind: input, shape index: {}]   ;;  %s678_s4 = inlined_call_operand.vmem [shape: f32[1,128], index: 4, kind: input, shape index: {}]   ;;  %s679_s5 = inlined_call_operand.hbm [shape: bf16[128,128], index: 5, kind: input, shape index: {}]   ;;  %s680_s6 = inlined_call_operand.vmem [shape: f32[1,128], index: 6, kind: input, shape index: {}]   ;;  %s681_s7 = inlined_call_operand.hbm [shape: f32[16,128], index: 7, kind: output, shape index: {}]  }
   0x1   :  { %13 = vsyncpa [#allocation6], 0 }
   0x2   :  { %14 = vsyncpa [#allocation9], 0  ;;  %s33_s26 = sshll.u32 %s675_s1, 4  ;;  %s34_s26 = int_to_ptr.hbm [resolvable:$true] %s33_s26 }
   0x3   :  { %15 = vsyncpa [#allocation4], 0  ;;  %s594_s27 = smov [#allocation5]   ;;  %s20_s8 = sshll.u32 %s674_s0, 4  ;;  %s21_s8 = int_to_ptr.hbm [resolvable:$true] %s20_s8 }
   0x4   :  { %s35_s28 = sshll.u32 %s594_s27, 4  ;;  %s595_s9 = smov 64   ;;  %s36_s28 = int_to_ptr.vmem [resolvable:$true] %s35_s28 }
   0x5   :  { %s596_s10 = smov 4   ;;  %s597_s11 = smov [#allocation2]  }
   0x6   :  { %41 = dma.hbm_to_vmem [thread:$0]  %s34_s26, 576, %s36_s28, [#allocation6], %s595_s9, %s595_s9, %s596_s10  }
   0x7   :  { %s22_s12 = sshll.u32 %s597_s11, 4  ;;  %s598_s13 = smov 128   ;;  %s23_s12 = int_to_ptr.vmem [resolvable:$true] %s22_s12 }
   0x8   :  { %s599_s14 = smov 8   ;;  %s48_s16 = sshll.u32 %s677_s3, 4  ;;  %s49_s16 = int_to_ptr.hbm [resolvable:$true] %s48_s16 }
   0x9   :  { %28 = dma.hbm_to_vmem [thread:$0]  %s21_s8, 256, %s23_s12, [#allocation3], %s598_s13, %s598_s13, %s599_s14  }
   0xa   :  { %s600_s17 = smov [#allocation7]   ;;  %s63_s20 = sshll.u32 %s679_s5, 4  ;;  %s64_s20 = int_to_ptr.hbm [resolvable:$true] %s63_s20 }
   0xb   :  { %s50_s0 = sshll.u32 %s600_s17, 4  ;;  %s601_s21 = smov [#allocation8]   ;;  %s51_s0 = int_to_ptr.vmem [resolvable:$true] %s50_s0 }
   0xc   :  { %56 = dma.hbm_to_vmem [thread:$0]  %s49_s16, 1024, %s51_s0, [#allocation6], %s595_s9, %s595_s9, %s596_s10  }
   0xd   :  { %s65_s22 = sshll.u32 %s601_s21, 4  ;;  %s66_s22 = int_to_ptr.vmem [resolvable:$true] %s65_s22 }
   0xe   :  { %71 = dma.hbm_to_vmem [thread:$0]  %s64_s20, 1024, %s66_s22, [#allocation9], %s595_s9, %s595_s9, %s596_s10  }
   0xf   :  { %586 = dma.done.wait [#allocation3], 256  }
  0x10   :  { %587 = vsyncadd [#allocation3], 4294967040 }
  0x11   :  { %588 = dma.done.wait [#allocation6], 1600  }
  0x12   :  { %589 = vsyncadd [#allocation6], 4294965696 }
  0x13   :  { %590 = dma.done.wait [#allocation9], 1024  }
  0x14   :  { %591 = vsyncadd [#allocation9], 4294966272  ;;  %vm138_vm0 = vcmask 1040384   ;;  %vm139_vm1 = vcmask 1041408   ;;  %v602_v0 = vmov 65535   ;;  %v444_v5 = vld [vmem:[#allocation7 + $0x38] sm:$0xff] }
  0x15   :  { %v140_v1 = vsel %vm138_vm0, 4294967295, %v602_v0  ;;  %v102_v2 = vld [vmem:[#allocation5 + $0x20] sm:$0x3]  ;;  %230 = vmatpush.bf16.msra.mxu1 %v444_v5  ;;  %v443_v7 = vld [vmem:[#allocation7 + $0x30] sm:$0xff]  ;;  %v442_v10 = vld [vmem:[#allocation7 + $0x28] sm:$0xff]  ;;  %vm134_vm2 = vcmask 547840  }
  0x16   :  { %v124_v3 = vunpack.c.l.b16 %v102_v2  ;;  %v141_v4 = vsel %vm139_vm1, %v140_v1, 0  ;;  %v436_v9 = vld [vmem:[#allocation5 + $0x18] sm:$0xff]  ;;  %v435_v11 = vld [vmem:[#allocation5 + $0x10] sm:$0xff]  ;;  %v441_v12 = vld [vmem:[#allocation7 + $0x20] sm:$0xff]  ;;  %s603_s26 = smov [#allocation10]  }
  0x17   :  { %v434_v13 = vld [vmem:[#allocation5 + $0x8] sm:$0xff]  ;;  %v433_v14 = vld [vmem:[#allocation5] sm:$0xff]  ;;  %v91_v15 = vld [vmem:[#allocation2] sm:$0xff]  ;;  %s335_s27 = sshll.u32 %s603_s26, 4  ;;  %s336_s27 = int_to_ptr.vmem [resolvable:$true] %s335_s27 }
  0x18   :  { %v129_v6 = vpack.c.b16 %v124_v3, %v124_v3  ;;  %v92_v16 = vld [vmem:[#allocation2 + $0x8] sm:$0xff]  ;;  %v438_v20 = vld [vmem:[#allocation7 + $0x8] sm:$0xff]  ;;  %v437_v21 = vld [vmem:[#allocation7] sm:$0xff] }
  0x19   :  { %231 = vmatpush.bf16.msra.mxu1 %v443_v7  ;;  %v93_v17 = vpack.c.bf16 %v92_v16, %v91_v15  ;;  %v440_v18 = vld [vmem:[#allocation7 + $0x18] sm:$0xff]  ;;  %v439_v19 = vld [vmem:[#allocation7 + $0x10] sm:$0xff]  ;;  %v450_v24 = vld [vmem:[#allocation8 + $0x28] sm:$0xff] }
  0x1a   :  { %v143_v8 = vand.u32 %v141_v4, %v129_v6  ;;  %v452_v22 = vld [vmem:[#allocation8 + $0x38] sm:$0xff]  ;;  %v451_v23 = vld [vmem:[#allocation8 + $0x30] sm:$0xff]  ;;  %v449_v25 = vld [vmem:[#allocation8 + $0x20] sm:$0xff] }
  0x1b   :  { %315 = vmatpush.bf16.msra.mxu2 %v452_v22  ;;  %v463_v27 = vld [vmem:[%s676_s2] ss:$0 sm:$0xff]  ;;  %v448_v34 = vld [vmem:[#allocation8 + $0x18] sm:$0xff]  ;;  %v447_v35 = vld [vmem:[#allocation8 + $0x10] sm:$0xff] }
  0x1c   :  { %148 = vmatpush.bf16.msra.mxu0 %v143_v8  ;;  %v446_v36 = vld [vmem:[#allocation8 + $0x8] sm:$0xff]  ;;  %v445_v37 = vld [vmem:[#allocation8] sm:$0xff] }
  0x1d   :  { %232 = vmatpush.bf16.msra.mxu1 %v442_v10  ;;  %v464_v39 = vld [vmem:[%s678_s4] ss:$0 sm:$0xff]  ;;  %s337_s4 = sshll.u32 %s681_s7, 4  ;;  %s338_s4 = int_to_ptr.hbm [resolvable:$true] %s337_s4 }
  0x1e   :  { %v465_v46 = vld [vmem:[%s680_s6] ss:$0 sm:$0xff] }
  0x1f   :  { %316 = vmatpush.bf16.msra.mxu2 %v451_v23 }
  0x20   :  { %149 = vmatpush.bf16.msra.mxu0 %v436_v9 }
  0x21   :  { %233 = vmatpush.bf16.msra.mxu1 %v441_v12 }
  0x23   :  { %317 = vmatpush.bf16.msra.mxu2 %v450_v24 }
  0x24   :  { %150 = vmatpush.bf16.msra.mxu0 %v435_v11 }
  0x25   :  { %234 = vmatpush.bf16.msra.mxu1 %v440_v18 }
  0x27   :  { %318 = vmatpush.bf16.msra.mxu2 %v449_v25 }
  0x28   :  { %151 = vmatpush.bf16.msra.mxu0 %v434_v13 }
  0x29   :  { %235 = vmatpush.bf16.msra.mxu1 %v439_v19 }
  0x2b   :  { %319 = vmatpush.bf16.msra.mxu2 %v448_v34 }
  0x2c   :  { %152 = vmatpush.bf16.msra.mxu0 %v433_v14 }
  0x2d   :  { %236 = vmatpush.bf16.msra.mxu1 %v438_v20 }
  0x2f   :  { %368 = vmatmul.msk.bf16.vlgmr.msra.gmra.mxu0 %vm134_vm2, %v93_v17  ;;  %320 = vmatpush.bf16.msra.mxu2 %v447_v35 }
  0x31   :  { %237 = vmatpush.bf16.msra.mxu1 %v437_v21 }
  0x33   :  { %321 = vmatpush.bf16.msra.mxu2 %v446_v36 }
  0x37   :  { %322 = vmatpush.bf16.msra.mxu2 %v445_v37 }
  0xac   :  { %v154_v26 = vpop.f32.mrf.mxu0 }
  0xad   :  { %v155_v28 = vadd.f32 %v463_v27, %v154_v26 }
  0xaf   :  { %v159_v31 = vmax.f32 %v155_v28, 0.0 }
  0xb4   :  { %v156_v29 = vpop.f32.mrf.mxu0 }
  0xb5   :  { %v157_v30 = vadd.f32 %v463_v27, %v156_v29 }
  0xb7   :  { %v160_v32 = vmax.f32 %v157_v30, 0.0 }
  0xb9   :  { %v161_v33 = vpack.c.bf16 %v160_v32, %v159_v31 }
  0xbb   :  { %238 = vmatmul.bf16.vlgmr.msra.gmra.mxu1 %v161_v33 }
 0x138   :  { %v239_v38 = vpop.f32.mrf.mxu1 }
 0x139   :  { %v240_v40 = vadd.f32 %v464_v39, %v239_v38 }
 0x13b   :  { %v244_v43 = vmax.f32 %v240_v40, 0.0 }
 0x140   :  { %v241_v41 = vpop.f32.mrf.mxu1 }
 0x141   :  { %v242_v42 = vadd.f32 %v464_v39, %v241_v41 }
 0x143   :  { %v245_v44 = vmax.f32 %v242_v42, 0.0 }
 0x145   :  { %v246_v45 = vpack.c.bf16 %v245_v44, %v244_v43 }
 0x147   :  { %323 = vmatmul.bf16.vlgmr.msra.gmra.mxu2 %v246_v45 }
 0x1ca   :  { %v324_v47 = vpop.f32.mrf.mxu2 }
 0x1cb   :  { %v325_v48 = vadd.f32 %v465_v46, %v324_v47 }
 0x1cd   :  { %329 = vst [vmem:[#allocation10] sm:$0xff] %v325_v48 }
 0x1d2   :  { %v326_v49 = vpop.f32.mrf.mxu2 }
 0x1d3   :  { %v327_v50 = vadd.f32 %v465_v46, %v326_v49 }
 0x1d5   :  { %330 = vst [vmem:[#allocation10 + $0x8] sm:$0xff] %v327_v50 }
 0x1d6   :  { %343 = dma.vmem_to_hbm [thread:$0]  %s336_s27, 256, %s338_s4, [#allocation4], %s598_s13, %s598_s13, %s599_s14  }
 0x1d7   :  { %592 = dma.done.wait [#allocation4], 256  }
 0x1d8   :  { %593 = vsyncadd [#allocation4], 4294967040 }
 0x1d9   :  { %348 = vsyncpa [#allocation3], 1 }
 0x1da   :  { %349 = vsyncpa [#allocation6], 1 }
 0x1db   :  { %350 = vsyncpa [#allocation9], 1 }
 0x1dc   :  { %351 = vsyncpa [#allocation4], 1 }

</bundles_post_ra>
